<compile_context>
chip_gen: v7x
topology: tpu7x:2x2x1
jax: 0.10.0
libtpu: 0.0.40
codegen_flags: <defaults>
</compile_context>

<pallas_src>
import math
from functools import partial

import jax
import jax.numpy as jnp
from jax import lax
from jax.experimental import pallas as pl
from jax.experimental.pallas import tpu as pltpu


def mha_kernel(x_ref, wqkv_ref, bqkv_ref, wp_ref, bp_ref, o_ref,
               qkv_ref, ctx_ref, *,
               num_heads, emb_size, seq_len, batch_tile, kv_tile, flash_threshold):
    """Processes `batch_tile` batch rows per grid step.  All refs live in VMEM."""
    E, H, N, Bt = emb_size, num_heads, seq_len, batch_tile
    D = E // H

    # ---- fused QKV projection: one bf16 MXU pass over the (E, 3E) weight.
    # The 1/sqrt(E) score scaling is already folded into the q columns of
    # wqkv / bqkv by the wrapper.
    x2d = x_ref[...].reshape(Bt * N, E).astype(jnp.bfloat16)
    qkv = jnp.dot(x2d, wqkv_ref[...], preferred_element_type=jnp.float32) + bqkv_ref[...]
    # Park q/k/v in a bf16 VMEM scratch slab; the loops below read slices back
    # from the ref so the big value is not live across the whole loop nest.
    qkv_ref[...] = qkv.reshape(Bt, N, 3 * E).astype(jnp.bfloat16)

    use_flash = N > flash_threshold
    num_kv = (N + kv_tile - 1) // kv_tile

    # TODO(synk): mask path (energy.mask_fill(~mask, -inf)) not implemented —
    # the module's default forward call uses mask=None, which is what we reproduce.
    @pl.loop(0, Bt)
    def _per_batch_row(b):
        for h in range(H):                          # static unroll over heads
            c0 = h * D
            q_h = qkv_ref[b, :, c0:c0 + D]          # (N, D) bf16

            if not use_flash:
                # K/V for this batch tile are already VMEM-resident: one score
                # matmul, one max/exp/sum pass, one PV matmul (no flash rescale).
                k_h = qkv_ref[b, :, E + c0:E + c0 + D]
                v_h = qkv_ref[b, :, 2 * E + c0:2 * E + c0 + D]
                # Contract on the last dim of both operands: no K transpose.
                s = lax.dot_general(q_h, k_h, (((1,), (1,)), ((), ())),
                                    preferred_element_type=jnp.float32)   # (N, N) f32
                m = jnp.max(s, axis=-1, keepdims=True)
                p = jnp.exp(s - m)                                        # f32 elementwise
                l = jnp.sum(p, axis=-1, keepdims=True)
                o = jnp.dot(p.astype(jnp.bfloat16), v_h,
                            preferred_element_type=jnp.float32)           # (N, D) f32
                out_h = o * pl.reciprocal(l, approx=True)
            else:
                # Long-N fallback: flash-style online softmax over KV tiles.
                m_i = l_i = acc = None
                for t in range(num_kv):
                    s0 = t * kv_tile
                    sz = min(kv_tile, N - s0)
                    k_t = qkv_ref[b, s0:s0 + sz, E + c0:E + c0 + D]
                    v_t = qkv_ref[b, s0:s0 + sz, 2 * E + c0:2 * E + c0 + D]
                    s = lax.dot_general(q_h, k_t, (((1,), (1,)), ((), ())),
                                        preferred_element_type=jnp.float32)
                    s_max = jnp.max(s, axis=-1, keepdims=True)
                    if t == 0:
                        m_i = s_max
                        p = jnp.exp(s - m_i)
                        l_i = jnp.sum(p, axis=-1, keepdims=True)
                        acc = jnp.dot(p.astype(jnp.bfloat16), v_t,
                                      preferred_element_type=jnp.float32)
                    else:
                        m_new = jnp.maximum(m_i, s_max)
                        alpha = jnp.exp(m_i - m_new)
                        p = jnp.exp(s - m_new)
                        l_i = alpha * l_i + jnp.sum(p, axis=-1, keepdims=True)
                        acc = alpha * acc + jnp.dot(p.astype(jnp.bfloat16), v_t,
                                                    preferred_element_type=jnp.float32)
                        m_i = m_new
                out_h = acc * pl.reciprocal(l_i, approx=True)

            # att_drop (nn.Dropout) is identity in eval mode — nothing to do.
            # TODO(synk): per-head store is lane-masked when D < 128; head-grouped
            # batched matmuls would make it lane-dense but need a layout permute.
            ctx_ref[b, :, c0:c0 + D] = out_h.astype(jnp.bfloat16)

    # ---- output projection from the lane-dense bf16 context slab.
    ctx2d = ctx_ref[...].reshape(Bt * N, E)
    out2d = jnp.dot(ctx2d, wp_ref[...], preferred_element_type=jnp.float32) + bp_ref[...]
    o_ref[...] = out2d.reshape(Bt, N, E).astype(o_ref.dtype)


def _pick_batch_tile(batch, seq_len, target_rows=512):
    """Largest divisor of `batch` with batch_tile*seq_len <= target_rows, capped so
    the grid has >= 2 steps when batch >= 2 (keeps both v7x TensorCores busy)."""
    limit = batch if batch < 2 else batch // 2
    best = 1
    for cand in range(1, limit + 1):
        if batch % cand == 0 and cand * seq_len <= max(target_rows, seq_len):
            best = cand
    return best


def _vmem_limit_bytes(batch_tile, seq_len, emb_size, kv_tile, use_flash):
    """Rough VMEM footprint: resident bf16 weights (single-buffered), double-buffered
    x/out blocks, qkv/ctx scratch slabs, plus main in-flight temporaries."""
    bf16, f32 = 2, 4
    E, N, Bt = emb_size, seq_len, batch_tile
    weights = (3 * E * E + E * E) * bf16 + 4 * E * f32
    io_blocks = 2 * (2 * Bt * N * E * f32)                 # x + out, 2 buffers each
    scratch = Bt * N * (3 * E + E) * bf16                  # qkv + ctx slabs
    score_cols = kv_tile if use_flash else N
    temps = Bt * N * 3 * E * f32 + 2 * N * score_cols * f32
    need = int((weights + io_blocks + scratch + temps) * 1.5)
    return int(min(max(need, 32 * 1024 * 1024), 128 * 1024 * 1024))


def multi_head_attention(x, params, num_heads, *, kv_tile=512, flash_threshold=1024,
                         target_rows=512):
    """params = (wq, bq, wk, bk, wv, bv, wp, bp); weights (E_in, E_out), biases (1, E_out)."""
    B, N, E = x.shape
    wq, bq, wk, bk, wv, bv, wp, bp = params
    H = num_heads
    D = E // H

    # Fold the 1/sqrt(emb_size) score scaling into the q projection (f32, then
    # cast), and fuse Q/K/V into a single (E, 3E) bf16 weight for one MXU pass.
    scale = 1.0 / math.sqrt(E)
    wqkv = jnp.concatenate([wq * scale, wk, wv], axis=1).astype(jnp.bfloat16)   # (E, 3E)
    bqkv = jnp.concatenate([bq * scale, bk, bv], axis=1).astype(jnp.float32)    # (1, 3E)
    wp_bf = wp.astype(jnp.bfloat16)
    bp_f32 = bp.astype(jnp.float32)

    Bt = _pick_batch_tile(B, N, target_rows=target_rows)
    kv_tile = max(1, min(kv_tile, N))
    use_flash = N > flash_threshold

    kernel = partial(mha_kernel, num_heads=H, emb_size=E, seq_len=N,
                     batch_tile=Bt, kv_tile=kv_tile, flash_threshold=flash_threshold)

    flops = (2 * B * N * E * (3 * E)          # fused QKV projection
             + 2 * B * N * E * E              # output projection
             + 4 * B * H * N * N * D)         # q@k^T and att@v
    cost = pl.CostEstimate(
        flops=flops,
        transcendentals=B * H * N * N,        # exp in softmax
        bytes_accessed=int(4 * (2 * B * N * E) + 2 * (wqkv.size + wp_bf.size)
                           + 4 * (bqkv.size + bp_f32.size)),
    )

    # Whole-array VMEM placement: one resident copy, no double-buffering, never
    # re-fetched across grid steps.
    weight_spec = pl.BlockSpec(memory_space=pltpu.MemorySpace.VMEM)

    return pl.pallas_call(
        kernel,
        out_shape=jax.ShapeDtypeStruct((B, N, E), x.dtype),
        grid=(B // Bt,),
        in_specs=[
            pl.BlockSpec((Bt, N, E), lambda i: (i, 0, 0)),     # x: Bt batch rows / step
            weight_spec, weight_spec,                          # fused Wqkv (bf16), bqkv (f32)
            weight_spec, weight_spec,                          # Wproj (bf16), bproj (f32)
        ],
        out_specs=pl.BlockSpec((Bt, N, E), lambda i: (i, 0, 0)),
        scratch_shapes=[
            pltpu.VMEM((Bt, N, 3 * E), jnp.bfloat16),          # resident q/k/v slab
            pltpu.VMEM((Bt, N, E), jnp.bfloat16),              # head-concat context slab
        ],
        compiler_params=pltpu.CompilerParams(
            dimension_semantics=("parallel",),
            vmem_limit_bytes=_vmem_limit_bytes(Bt, N, E, kv_tile, use_flash),
        ),
        cost_estimate=cost,
    )(x, wqkv, bqkv, wp_bf, bp_f32)


def mha_reference(x, params, num_heads):
    """Plain-JAX (f32) reference matching the PyTorch forward (mask=None, eval)."""
    wq, bq, wk, bk, wv, bv, wp, bp = params
    B, N, E = x.shape
    D = E // num_heads

    def split_heads(y):
        return y.reshape(B, N, num_heads, D).transpose(0, 2, 1, 3)   # b h n d

    q = split_heads(x @ wq + bq)
    k = split_heads(x @ wk + bk)
    v = split_heads(x @ wv + bv)
    energy = jnp.einsum('bhqd,bhkd->bhqk', q, k) / (E ** 0.5)
    att = jax.nn.softmax(energy, axis=-1)
    out = jnp.einsum('bhal,bhlv->bhav', att, v)
    out = out.transpose(0, 2, 1, 3).reshape(B, N, E)
    return out @ wp + bp


def init_linear(key, in_features, out_features):
    """Deterministic nn.Linear-style init; returns (W_T (in,out), b (1,out))."""
    kw, kb = jax.random.split(key)
    bound = 1.0 / math.sqrt(in_features)
    w = jax.random.uniform(kw, (in_features, out_features), jnp.float32, -bound, bound)
    b = jax.random.uniform(kb, (1, out_features), jnp.float32, -bound, bound)
    return w, b


if __name__ == "__main__":
    B, N, E, H = 2, 8, 32, 4
    key = jax.random.PRNGKey(0)
    kx, kq, kk, kv, kp = jax.random.split(key, 5)

    x = jax.random.normal(kx, (B, N, E), dtype=jnp.float32)
    wq, bq = init_linear(kq, E, E)
    wk, bk = init_linear(kk, E, E)
    wv, bv = init_linear(kv, E, E)
    wp, bp = init_linear(kp, E, E)
    params = (wq, bq, wk, bk, wv, bv, wp, bp)

    out = multi_head_attention(x, params, H)
    out = jax.block_until_ready(out)

    ref = mha_reference(x, params, H)
    assert out.shape == (B, N, E)
    # bf16 MXU operands => looser tolerance than the f32 reference.
    assert jnp.allclose(out, ref, atol=3e-2, rtol=3e-2), \
        f"max abs diff {jnp.max(jnp.abs(out - ref))}"

    print("KERNEL_OK")
</pallas_src>

<mosaic_0001>
module attributes {stable_mosaic.version = 11 : i64} {
  func.func @mha_kernel(%arg0: i32, %arg1: memref<1x8x32xf32, #tpu.memory_space<vmem>>, %arg2: memref<32x96xbf16, #tpu.memory_space<vmem>>, %arg3: memref<1x96xf32, #tpu.memory_space<vmem>>, %arg4: memref<32x32xbf16, #tpu.memory_space<vmem>>, %arg5: memref<1x32xf32, #tpu.memory_space<vmem>>, %arg6: memref<1x8x32xf32, #tpu.memory_space<vmem>>, %arg7: memref<1x8x96xbf16, #tpu.memory_space<vmem>>, %arg8: memref<1x8x32xbf16, #tpu.memory_space<vmem>>) attributes {dimension_semantics = [#tpu.dimension_semantics<parallel>], iteration_bounds = array<i64: 2>, scalar_prefetch = 0 : i64, scratch_operands = 2 : i64, tpu.core_type = #tpu.core_type<tc>, window_params = [{transform_indices = @transform_0, window_bounds = array<i64: 1, 8, 32>}, {pipeline_mode = #tpu.pipeline_mode<synchronous>, transform_indices = @transform_1, window_bounds = array<i64: 32, 96>}, {pipeline_mode = #tpu.pipeline_mode<synchronous>, transform_indices = @transform_2, window_bounds = array<i64: 1, 96>}, {pipeline_mode = #tpu.pipeline_mode<synchronous>, transform_indices = @transform_3, window_bounds = array<i64: 32, 32>}, {pipeline_mode = #tpu.pipeline_mode<synchronous>, transform_indices = @transform_4, window_bounds = array<i64: 1, 32>}, {transform_indices = @transform_5, window_bounds = array<i64: 1, 8, 32>}]} {
    %c0 = arith.constant 0 : index
    %c0_0 = arith.constant 0 : index
    %c0_1 = arith.constant 0 : index
    %0 = vector.load %arg1[%c0, %c0_0, %c0_1] : memref<1x8x32xf32, #tpu.memory_space<vmem>>, vector<1x8x32xf32>
    %1 = vector.shape_cast %0 : vector<1x8x32xf32> to vector<8x32xf32>
    %2 = arith.truncf %1 : vector<8x32xf32> to vector<8x32xbf16>
    %c0_2 = arith.constant 0 : index
    %c0_3 = arith.constant 0 : index
    %3 = vector.load %arg2[%c0_2, %c0_3] : memref<32x96xbf16, #tpu.memory_space<vmem>>, vector<32x96xbf16>
    %cst = arith.constant dense<0.000000e+00> : vector<8x96xf32>
    %4 = tpu.matmul %2, %3, %cst {dimension_numbers = #tpu.dot_dimension_numbers<[1], [0], [0], [1], [0, 0, 1, 1], [], []>} : vector<8x32xbf16>, vector<32x96xbf16>, vector<8x96xf32> -> vector<8x96xf32>
    %c0_4 = arith.constant 0 : index
    %c0_5 = arith.constant 0 : index
    %5 = vector.load %arg3[%c0_4, %c0_5] : memref<1x96xf32, #tpu.memory_space<vmem>>, vector<1x96xf32>
    %6 = vector.broadcast %5 : vector<1x96xf32> to vector<8x96xf32>
    %7 = arith.addf %4, %6 : vector<8x96xf32>
    %8 = vector.shape_cast %7 : vector<8x96xf32> to vector<1x8x96xf32>
    %9 = arith.truncf %8 : vector<1x8x96xf32> to vector<1x8x96xbf16>
    %c0_6 = arith.constant 0 : index
    %c0_7 = arith.constant 0 : index
    %c0_8 = arith.constant 0 : index
    %10 = vector.load %arg7[%c0_6, %c0_7, %c0_8] : memref<1x8x96xbf16, #tpu.memory_space<vmem>>, vector<1x8x96xbf16>
    tpu.vector_store %arg7[%c0_6, %c0_7, %c0_8], %9 {strides = array<i32>} : memref<1x8x96xbf16, #tpu.memory_space<vmem>>, vector<1x8x96xbf16>,
    %c0_i32 = arith.constant 0 : i32
    %c1_i32 = arith.constant 1 : i32
    %11 = arith.muli %c0_i32, %c1_i32 : i32
    %c0_i32_9 = arith.constant 0 : i32
    %12 = arith.addi %c0_i32_9, %11 : i32
    %13 = arith.index_cast %12 : i32 to index
    %c0_10 = arith.constant 0 : index
    %c0_11 = arith.constant 0 : index
    %14 = vector.load %arg7[%13, %c0_10, %c0_11] : memref<1x8x96xbf16, #tpu.memory_space<vmem>>, vector<1x8x8xbf16>
    %15 = vector.shape_cast %14 : vector<1x8x8xbf16> to vector<8x8xbf16>
    %16 = arith.index_cast %12 : i32 to index
    %c0_12 = arith.constant 0 : index
    %c32 = arith.constant 32 : index
    %17 = vector.load %arg7[%16, %c0_12, %c32] : memref<1x8x96xbf16, #tpu.memory_space<vmem>>, vector<1x8x8xbf16>
    %18 = vector.shape_cast %17 : vector<1x8x8xbf16> to vector<8x8xbf16>
    %19 = arith.index_cast %12 : i32 to index
    %c0_13 = arith.constant 0 : index
    %c64 = arith.constant 64 : index
    %20 = vector.load %arg7[%19, %c0_13, %c64] : memref<1x8x96xbf16, #tpu.memory_space<vmem>>, vector<1x8x8xbf16>
    %21 = vector.shape_cast %20 : vector<1x8x8xbf16> to vector<8x8xbf16>
    %cst_14 = arith.constant dense<0.000000e+00> : vector<8x8xf32>
    %22 = tpu.matmul %15, %18, %cst_14 {dimension_numbers = #tpu.dot_dimension_numbers<[1], [1], [0], [0], [0, 0, 1, 0], [], []>} : vector<8x8xbf16>, vector<8x8xbf16>, vector<8x8xf32> -> vector<8x8xf32>
    %cst_15 = arith.constant dense<0xFF800000> : vector<8xf32>
    %23 = vector.multi_reduction <maximumf>, %22, %cst_15 [1] : vector<8x8xf32> to vector<8xf32>
    %24 = vector.shape_cast %23 : vector<8xf32> to vector<8x1xf32>
    %25 = vector.broadcast %24 : vector<8x1xf32> to vector<8x8xf32>
    %26 = arith.subf %22, %25 : vector<8x8xf32>
    %27 = math.exp %26 : vector<8x8xf32>
    %cst_16 = arith.constant dense<0.000000e+00> : vector<8xf32>
    %28 = vector.multi_reduction <add>, %27, %cst_16 [1] : vector<8x8xf32> to vector<8xf32>
    %29 = vector.shape_cast %28 : vector<8xf32> to vector<8x1xf32>
    %30 = arith.truncf %27 : vector<8x8xf32> to vector<8x8xbf16>
    %cst_17 = arith.constant dense<0.000000e+00> : vector<8x8xf32>
    %31 = tpu.matmul %30, %21, %cst_17 {dimension_numbers = #tpu.dot_dimension_numbers<[1], [0], [0], [1], [0, 0, 1, 1], [], []>} : vector<8x8xbf16>, vector<8x8xbf16>, vector<8x8xf32> -> vector<8x8xf32>
    %32 = tpu.reciprocal %29 {approx = true} : vector<8x1xf32> -> vector<8x1xf32>
    %33 = vector.broadcast %32 : vector<8x1xf32> to vector<8x8xf32>
    %34 = arith.mulf %31, %33 : vector<8x8xf32>
    %35 = arith.truncf %34 : vector<8x8xf32> to vector<8x8xbf16>
    %36 = arith.index_cast %12 : i32 to index
    %c0_18 = arith.constant 0 : index
    %c0_19 = arith.constant 0 : index
    %37 = vector.load %arg8[%36, %c0_18, %c0_19] : memref<1x8x32xbf16, #tpu.memory_space<vmem>>, vector<1x8x8xbf16>
    %38 = vector.shape_cast %37 : vector<1x8x8xbf16> to vector<8x8xbf16>
    %39 = vector.shape_cast %35 : vector<8x8xbf16> to vector<1x8x8xbf16>
    tpu.vector_store %arg8[%36, %c0_18, %c0_19], %39 {strides = array<i32>} : memref<1x8x32xbf16, #tpu.memory_space<vmem>>, vector<1x8x8xbf16>,
    %40 = arith.index_cast %12 : i32 to index
    %c0_20 = arith.constant 0 : index
    %c8 = arith.constant 8 : index
    %41 = vector.load %arg7[%40, %c0_20, %c8] : memref<1x8x96xbf16, #tpu.memory_space<vmem>>, vector<1x8x8xbf16>
    %42 = vector.shape_cast %41 : vector<1x8x8xbf16> to vector<8x8xbf16>
    %43 = arith.index_cast %12 : i32 to index
    %c0_21 = arith.constant 0 : index
    %c40 = arith.constant 40 : index
    %44 = vector.load %arg7[%43, %c0_21, %c40] : memref<1x8x96xbf16, #tpu.memory_space<vmem>>, vector<1x8x8xbf16>
    %45 = vector.shape_cast %44 : vector<1x8x8xbf16> to vector<8x8xbf16>
    %46 = arith.index_cast %12 : i32 to index
    %c0_22 = arith.constant 0 : index
    %c72 = arith.constant 72 : index
    %47 = vector.load %arg7[%46, %c0_22, %c72] : memref<1x8x96xbf16, #tpu.memory_space<vmem>>, vector<1x8x8xbf16>
    %48 = vector.shape_cast %47 : vector<1x8x8xbf16> to vector<8x8xbf16>
    %cst_23 = arith.constant dense<0.000000e+00> : vector<8x8xf32>
    %49 = tpu.matmul %42, %45, %cst_23 {dimension_numbers = #tpu.dot_dimension_numbers<[1], [1], [0], [0], [0, 0, 1, 0], [], []>} : vector<8x8xbf16>, vector<8x8xbf16>, vector<8x8xf32> -> vector<8x8xf32>
    %cst_24 = arith.constant dense<0xFF800000> : vector<8xf32>
    %50 = vector.multi_reduction <maximumf>, %49, %cst_24 [1] : vector<8x8xf32> to vector<8xf32>
    %51 = vector.shape_cast %50 : vector<8xf32> to vector<8x1xf32>
    %52 = vector.broadcast %51 : vector<8x1xf32> to vector<8x8xf32>
    %53 = arith.subf %49, %52 : vector<8x8xf32>
    %54 = math.exp %53 : vector<8x8xf32>
    %cst_25 = arith.constant dense<0.000000e+00> : vector<8xf32>
    %55 = vector.multi_reduction <add>, %54, %cst_25 [1] : vector<8x8xf32> to vector<8xf32>
    %56 = vector.shape_cast %55 : vector<8xf32> to vector<8x1xf32>
    %57 = arith.truncf %54 : vector<8x8xf32> to vector<8x8xbf16>
    %cst_26 = arith.constant dense<0.000000e+00> : vector<8x8xf32>
    %58 = tpu.matmul %57, %48, %cst_26 {dimension_numbers = #tpu.dot_dimension_numbers<[1], [0], [0], [1], [0, 0, 1, 1], [], []>} : vector<8x8xbf16>, vector<8x8xbf16>, vector<8x8xf32> -> vector<8x8xf32>
    %59 = tpu.reciprocal %56 {approx = true} : vector<8x1xf32> -> vector<8x1xf32>
    %60 = vector.broadcast %59 : vector<8x1xf32> to vector<8x8xf32>
    %61 = arith.mulf %58, %60 : vector<8x8xf32>
    %62 = arith.truncf %61 : vector<8x8xf32> to vector<8x8xbf16>
    %63 = arith.index_cast %12 : i32 to index
    %c0_27 = arith.constant 0 : index
    %c8_28 = arith.constant 8 : index
    %64 = vector.load %arg8[%63, %c0_27, %c8_28] : memref<1x8x32xbf16, #tpu.memory_space<vmem>>, vector<1x8x8xbf16>
    %65 = vector.shape_cast %64 : vector<1x8x8xbf16> to vector<8x8xbf16>
    %66 = vector.shape_cast %62 : vector<8x8xbf16> to vector<1x8x8xbf16>
    tpu.vector_store %arg8[%63, %c0_27, %c8_28], %66 {strides = array<i32>} : memref<1x8x32xbf16, #tpu.memory_space<vmem>>, vector<1x8x8xbf16>,
    %67 = arith.index_cast %12 : i32 to index
    %c0_29 = arith.constant 0 : index
    %c16 = arith.constant 16 : index
    %68 = vector.load %arg7[%67, %c0_29, %c16] : memref<1x8x96xbf16, #tpu.memory_space<vmem>>, vector<1x8x8xbf16>
    %69 = vector.shape_cast %68 : vector<1x8x8xbf16> to vector<8x8xbf16>
    %70 = arith.index_cast %12 : i32 to index
    %c0_30 = arith.constant 0 : index
    %c48 = arith.constant 48 : index
    %71 = vector.load %arg7[%70, %c0_30, %c48] : memref<1x8x96xbf16, #tpu.memory_space<vmem>>, vector<1x8x8xbf16>
    %72 = vector.shape_cast %71 : vector<1x8x8xbf16> to vector<8x8xbf16>
    %73 = arith.index_cast %12 : i32 to index
    %c0_31 = arith.constant 0 : index
    %c80 = arith.constant 80 : index
    %74 = vector.load %arg7[%73, %c0_31, %c80] : memref<1x8x96xbf16, #tpu.memory_space<vmem>>, vector<1x8x8xbf16>
    %75 = vector.shape_cast %74 : vector<1x8x8xbf16> to vector<8x8xbf16>
    %cst_32 = arith.constant dense<0.000000e+00> : vector<8x8xf32>
    %76 = tpu.matmul %69, %72, %cst_32 {dimension_numbers = #tpu.dot_dimension_numbers<[1], [1], [0], [0], [0, 0, 1, 0], [], []>} : vector<8x8xbf16>, vector<8x8xbf16>, vector<8x8xf32> -> vector<8x8xf32>
    %cst_33 = arith.constant dense<0xFF800000> : vector<8xf32>
    %77 = vector.multi_reduction <maximumf>, %76, %cst_33 [1] : vector<8x8xf32> to vector<8xf32>
    %78 = vector.shape_cast %77 : vector<8xf32> to vector<8x1xf32>
    %79 = vector.broadcast %78 : vector<8x1xf32> to vector<8x8xf32>
    %80 = arith.subf %76, %79 : vector<8x8xf32>
    %81 = math.exp %80 : vector<8x8xf32>
    %cst_34 = arith.constant dense<0.000000e+00> : vector<8xf32>
    %82 = vector.multi_reduction <add>, %81, %cst_34 [1] : vector<8x8xf32> to vector<8xf32>
    %83 = vector.shape_cast %82 : vector<8xf32> to vector<8x1xf32>
    %84 = arith.truncf %81 : vector<8x8xf32> to vector<8x8xbf16>
    %cst_35 = arith.constant dense<0.000000e+00> : vector<8x8xf32>
    %85 = tpu.matmul %84, %75, %cst_35 {dimension_numbers = #tpu.dot_dimension_numbers<[1], [0], [0], [1], [0, 0, 1, 1], [], []>} : vector<8x8xbf16>, vector<8x8xbf16>, vector<8x8xf32> -> vector<8x8xf32>
    %86 = tpu.reciprocal %83 {approx = true} : vector<8x1xf32> -> vector<8x1xf32>
    %87 = vector.broadcast %86 : vector<8x1xf32> to vector<8x8xf32>
    %88 = arith.mulf %85, %87 : vector<8x8xf32>
    %89 = arith.truncf %88 : vector<8x8xf32> to vector<8x8xbf16>
    %90 = arith.index_cast %12 : i32 to index
    %c0_36 = arith.constant 0 : index
    %c16_37 = arith.constant 16 : index
    %91 = vector.load %arg8[%90, %c0_36, %c16_37] : memref<1x8x32xbf16, #tpu.memory_space<vmem>>, vector<1x8x8xbf16>
    %92 = vector.shape_cast %91 : vector<1x8x8xbf16> to vector<8x8xbf16>
    %93 = vector.shape_cast %89 : vector<8x8xbf16> to vector<1x8x8xbf16>
    tpu.vector_store %arg8[%90, %c0_36, %c16_37], %93 {strides = array<i32>} : memref<1x8x32xbf16, #tpu.memory_space<vmem>>, vector<1x8x8xbf16>,
    %94 = arith.index_cast %12 : i32 to index
    %c0_38 = arith.constant 0 : index
    %c24 = arith.constant 24 : index
    %95 = vector.load %arg7[%94, %c0_38, %c24] : memref<1x8x96xbf16, #tpu.memory_space<vmem>>, vector<1x8x8xbf16>
    %96 = vector.shape_cast %95 : vector<1x8x8xbf16> to vector<8x8xbf16>
    %97 = arith.index_cast %12 : i32 to index
    %c0_39 = arith.constant 0 : index
    %c56 = arith.constant 56 : index
    %98 = vector.load %arg7[%97, %c0_39, %c56] : memref<1x8x96xbf16, #tpu.memory_space<vmem>>, vector<1x8x8xbf16>
    %99 = vector.shape_cast %98 : vector<1x8x8xbf16> to vector<8x8xbf16>
    %100 = arith.index_cast %12 : i32 to index
    %c0_40 = arith.constant 0 : index
    %c88 = arith.constant 88 : index
    %101 = vector.load %arg7[%100, %c0_40, %c88] : memref<1x8x96xbf16, #tpu.memory_space<vmem>>, vector<1x8x8xbf16>
    %102 = vector.shape_cast %101 : vector<1x8x8xbf16> to vector<8x8xbf16>
    %cst_41 = arith.constant dense<0.000000e+00> : vector<8x8xf32>
    %103 = tpu.matmul %96, %99, %cst_41 {dimension_numbers = #tpu.dot_dimension_numbers<[1], [1], [0], [0], [0, 0, 1, 0], [], []>} : vector<8x8xbf16>, vector<8x8xbf16>, vector<8x8xf32> -> vector<8x8xf32>
    %cst_42 = arith.constant dense<0xFF800000> : vector<8xf32>
    %104 = vector.multi_reduction <maximumf>, %103, %cst_42 [1] : vector<8x8xf32> to vector<8xf32>
    %105 = vector.shape_cast %104 : vector<8xf32> to vector<8x1xf32>
    %106 = vector.broadcast %105 : vector<8x1xf32> to vector<8x8xf32>
    %107 = arith.subf %103, %106 : vector<8x8xf32>
    %108 = math.exp %107 : vector<8x8xf32>
    %cst_43 = arith.constant dense<0.000000e+00> : vector<8xf32>
    %109 = vector.multi_reduction <add>, %108, %cst_43 [1] : vector<8x8xf32> to vector<8xf32>
    %110 = vector.shape_cast %109 : vector<8xf32> to vector<8x1xf32>
    %111 = arith.truncf %108 : vector<8x8xf32> to vector<8x8xbf16>
    %cst_44 = arith.constant dense<0.000000e+00> : vector<8x8xf32>
    %112 = tpu.matmul %111, %102, %cst_44 {dimension_numbers = #tpu.dot_dimension_numbers<[1], [0], [0], [1], [0, 0, 1, 1], [], []>} : vector<8x8xbf16>, vector<8x8xbf16>, vector<8x8xf32> -> vector<8x8xf32>
    %113 = tpu.reciprocal %110 {approx = true} : vector<8x1xf32> -> vector<8x1xf32>
    %114 = vector.broadcast %113 : vector<8x1xf32> to vector<8x8xf32>
    %115 = arith.mulf %112, %114 : vector<8x8xf32>
    %116 = arith.truncf %115 : vector<8x8xf32> to vector<8x8xbf16>
    %117 = arith.index_cast %12 : i32 to index
    %c0_45 = arith.constant 0 : index
    %c24_46 = arith.constant 24 : index
    %118 = vector.load %arg8[%117, %c0_45, %c24_46] : memref<1x8x32xbf16, #tpu.memory_space<vmem>>, vector<1x8x8xbf16>
    %119 = vector.shape_cast %118 : vector<1x8x8xbf16> to vector<8x8xbf16>
    %120 = vector.shape_cast %116 : vector<8x8xbf16> to vector<1x8x8xbf16>
    tpu.vector_store %arg8[%117, %c0_45, %c24_46], %120 {strides = array<i32>} : memref<1x8x32xbf16, #tpu.memory_space<vmem>>, vector<1x8x8xbf16>,
    %c1_i32_47 = arith.constant 1 : i32
    %c0_48 = arith.constant 0 : index
    %c0_49 = arith.constant 0 : index
    %c0_50 = arith.constant 0 : index
    %121 = vector.load %arg8[%c0_48, %c0_49, %c0_50] : memref<1x8x32xbf16, #tpu.memory_space<vmem>>, vector<1x8x32xbf16>
    %122 = vector.shape_cast %121 : vector<1x8x32xbf16> to vector<8x32xbf16>
    %c0_51 = arith.constant 0 : index
    %c0_52 = arith.constant 0 : index
    %123 = vector.load %arg4[%c0_51, %c0_52] : memref<32x32xbf16, #tpu.memory_space<vmem>>, vector<32x32xbf16>
    %cst_53 = arith.constant dense<0.000000e+00> : vector<8x32xf32>
    %124 = tpu.matmul %122, %123, %cst_53 {dimension_numbers = #tpu.dot_dimension_numbers<[1], [0], [0], [1], [0, 0, 1, 1], [], []>} : vector<8x32xbf16>, vector<32x32xbf16>, vector<8x32xf32> -> vector<8x32xf32>
    %c0_54 = arith.constant 0 : index
    %c0_55 = arith.constant 0 : index
    %125 = vector.load %arg5[%c0_54, %c0_55] : memref<1x32xf32, #tpu.memory_space<vmem>>, vector<1x32xf32>
    %126 = vector.broadcast %125 : vector<1x32xf32> to vector<8x32xf32>
    %127 = arith.addf %124, %126 : vector<8x32xf32>
    %128 = vector.shape_cast %127 : vector<8x32xf32> to vector<1x8x32xf32>
    %c0_56 = arith.constant 0 : index
    %c0_57 = arith.constant 0 : index
    %c0_58 = arith.constant 0 : index
    %129 = vector.load %arg6[%c0_56, %c0_57, %c0_58] : memref<1x8x32xf32, #tpu.memory_space<vmem>>, vector<1x8x32xf32>
    tpu.vector_store %arg6[%c0_56, %c0_57, %c0_58], %128 {strides = array<i32>} : memref<1x8x32xf32, #tpu.memory_space<vmem>>, vector<1x8x32xf32>,
    return
  }
  func.func @transform_0(%arg0: i32) -> (i32, i32, i32) {
    %c0_i32 = arith.constant 0 : i32
    %c0_i32_0 = arith.constant 0 : i32
    %c0_i32_1 = arith.constant 0 : i32
    return %arg0, %c0_i32, %c0_i32_0 : i32, i32, i32
  }
  func.func @transform_1(%arg0: i32) -> (i32, i32) {
    %c0_i32 = arith.constant 0 : i32
    %c0_i32_0 = arith.constant 0 : i32
    %c0_i32_1 = arith.constant 0 : i32
    return %c0_i32, %c0_i32_0 : i32, i32
  }
  func.func @transform_2(%arg0: i32) -> (i32, i32) {
    %c0_i32 = arith.constant 0 : i32
    %c0_i32_0 = arith.constant 0 : i32
    %c0_i32_1 = arith.constant 0 : i32
    return %c0_i32, %c0_i32_0 : i32, i32
  }
  func.func @transform_3(%arg0: i32) -> (i32, i32) {
    %c0_i32 = arith.constant 0 : i32
    %c0_i32_0 = arith.constant 0 : i32
    %c0_i32_1 = arith.constant 0 : i32
    return %c0_i32, %c0_i32_0 : i32, i32
  }
  func.func @transform_4(%arg0: i32) -> (i32, i32) {
    %c0_i32 = arith.constant 0 : i32
    %c0_i32_0 = arith.constant 0 : i32
    %c0_i32_1 = arith.constant 0 : i32
    return %c0_i32, %c0_i32_0 : i32, i32
  }
  func.func @transform_5(%arg0: i32) -> (i32, i32, i32) {
    %c0_i32 = arith.constant 0 : i32
    %c0_i32_0 = arith.constant 0 : i32
    %c0_i32_1 = arith.constant 0 : i32
    return %arg0, %c0_i32, %c0_i32_0 : i32, i32, i32
  }
}

</mosaic_0001>

<bundles_post_ra>
// kernel: tpu_custom_call.1
= control target key start
LH: loop header
LB: loop body
LE: loop exit
PB: predicated region body
PF: predicated region fallthrough
CT: control target
= control target key end

     0   :  { %10 = vsyncpa [#allocation5], 0  ;;  %s1758_s0 = inlined_call_operand.hbm [shape: f32[2,8,32], index: 0, kind: input, shape index: {}]   ;;  %s1759_s1 = inlined_call_operand.hbm [shape: bf16[32,96], index: 1, kind: input, shape index: {}]   ;;  %s1760_s2 = inlined_call_operand.vmem [shape: f32[1,96], index: 2, kind: input, shape index: {}]   ;;  %s1761_s3 = inlined_call_operand.hbm [shape: bf16[32,32], index: 3, kind: input, shape index: {}]   ;;  %s1762_s4 = inlined_call_operand.vmem [shape: f32[1,32], index: 4, kind: input, shape index: {}]   ;;  %s1763_s5 = inlined_call_operand.hbm [shape: f32[2,8,32], index: 5, kind: output, shape index: {}]  }
   0x1   :  { %12 = vsyncpa [#allocation5 + $0x1], 0 }
   0x2   :  { %13 = vsyncpa [#allocation8], 0 }
   0x3   :  { %14 = vsyncpa [#allocation6], 0 }
   0x4   :  { %16 = vsyncpa [#allocation6 + $0x1], 0  ;;  %s1446_s18 = smov 0   ;;  %s1448_s19 = smov 0  }
   0x5   :  { %s1450_s20 = smov 0   ;;  %s1452_s21 = smov 0  }
   0x6 LB: > { %s1467_s22 = sadd.s32 4294967295, %s1392_s21   ;;  %s999_s23 = sadd.s32 4294967294, %s1392_s21   ;;  %s1392_s21 = sphi %s1452_s21, %s1783_s21   ;;  %s1388_s20 = sphi %s1450_s20, %s1782_s20   ;;  %s1384_s19 = sphi %s1448_s19, %s1781_s19   ;;  %s1380_s18 = sphi %s1446_s18, %s1780_s18  }
   0x7   : > { %p42_p0 = scmp.ne.s32.totalorder %s1384_s19, %s1380_s18  ;;  %p1764_p1 = scmp.eq.s32.totalorder %s1467_s22, 0 }
   0x8   : > { %p156_p3 = scmp.eq.s32.totalorder %s999_s23, 1  ;;  %p1000_p5 = scmp.ge.s32.totalorder %s1392_s21, 1 }
   0x9   : > { %p1476_p4 = por %p1764_p1, %p42_p0  ;;  %p163_p7 = scmp.lt.s32.totalorder %s1392_s21, 3 }
   0xa   : > { %p1481_p6 = por %p156_p3, %p42_p0  ;;  %s1394_s27 = smov [#allocation7]  }
   0xb   : > { %s1767_s24 = scalar_select %p1476_p4, 1, 0 }
   0xc   : > { %s1768_s25 = scalar_select %p1481_p6, 1, 0 }
   0xd   : > { %p1486_p8 = pnand %p1000_p5, %p163_p7  ;;  %s175_s28 = sshll.u32 %s1394_s27, 4  ;;  %s1490_s28 = int_to_ptr.vmem [resolvable:$true] %s175_s28 }
   0xe   : > { %s1395_s30 = smov [#allocation9]   ;;  %s1236_s9 = scalar_lea.hbm %s1759_s1, 256 }
   0xf   : > { %p1139_p9 = pneg %p1486_p8  ;;  %s191_s6 = sshll.u32 %s1395_s30, 4  ;;  %s1501_s6 = int_to_ptr.vmem [resolvable:$true] %s191_s6 }
  0x10   : > { %p1237_p12 = scmp.ne.s32.totalorder %s1759_s1, %s1236_s9  ;;  %p1243_p5 = scmp.lt.u32.totalorder %s1236_s9, %s1759_s1 }
  0x11   : > { %p1497_p11 = pnand %p1139_p9, %p1764_p1 }
  0x13   : > { %p1238_p13 = pneg %p1497_p11 }
  0x15   : > { %p1239_p0 = pnand %p1238_p13, %p1237_p12 }
  0x17   : > { %p1240_p3 = pneg %p1239_p0 }
  0x19   : > { %p1245_p7 = pnand %p1243_p5, %p1240_p3 }
  0x1b   : > { %1248 = shalt.err (!%p1245_p7)
}
  0x1c   : > { %s1249_s14 = scalar_lea.vmem %s1490_s28, 256  ;;  %p1257_p2 = scmp.lt.s32.totalorder %s1490_s28, %s1490_s28 }
  0x1d   : > { %p1250_p9 = scmp.ne.s32.totalorder %s1490_s28, %s1249_s14  ;;  %p1258_p12 = scmp.lt.s32.totalorder %s1249_s14, %s1249_s14 }
  0x1f   : > { %p1252_p10 = pnand %p1250_p9, %p1238_p13  ;;  %p1259_p0 = por %p1258_p12, %p1257_p2 }
  0x21   : > { %p1253_p1 = pneg %p1252_p10 }
  0x23   : > { %p1260_p6 = pnand %p1259_p0, %p1253_p1 }
  0x25   : > { %1263 = shalt.err (!%p1260_p6)
}
  0x26   : > { %s1396_s15 = smov 64   ;;  %s1397_s16 = smov 4  }
  0x27   : > { %1142 = dma.hbm_to_vmem [thread:$0]  (!%p1497_p11), %s1759_s1, 256, %s1490_s28, [#allocation8], %s1396_s15, %s1396_s15, %s1397_s16  }
  0x28   : > { %s1264_s7 = scalar_lea.hbm %s1761_s3, 256 }
  0x29   : > { %p1265_p2 = scmp.ne.s32.totalorder %s1761_s3, %s1264_s7  ;;  %p1271_p10 = scmp.lt.u32.totalorder %s1264_s7, %s1761_s3 }
  0x2b   : > { %p1267_p1 = pnand %p1265_p2, %p1238_p13 }
  0x2d   : > { %p1268_p6 = pneg %p1267_p1 }
  0x2f   : > { %p1273_p3 = pnand %p1271_p10, %p1268_p6 }
  0x31   : > { %1276 = shalt.err (!%p1273_p3)
}
  0x32   : > { %s1277_s28 = scalar_lea.vmem %s1501_s6, 256  ;;  %p1285_p12 = scmp.lt.s32.totalorder %s1501_s6, %s1501_s6 }
  0x33   : > { %p1278_p5 = scmp.ne.s32.totalorder %s1501_s6, %s1277_s28  ;;  %p1286_p0 = scmp.lt.s32.totalorder %s1277_s28, %s1277_s28 }
  0x35   : > { %p1280_p7 = pnand %p1278_p5, %p1238_p13  ;;  %p1287_p2 = por %p1286_p0, %p1285_p12 }
  0x37   : > { %p1281_p9 = pneg %p1280_p7 }
  0x39   : > { %p1288_p1 = pnand %p1287_p2, %p1281_p9 }
  0x3b   : > { %1291 = shalt.err (!%p1288_p1)
}
  0x3c   : > { %1145 = dma.hbm_to_vmem [thread:$0]  (!%p1497_p11), %s1761_s3, 256, %s1501_s6, [#allocation8], %s1396_s15, %s1396_s15, %s1397_s16  }
  0x3d   : > { %s1556_s14 = sadd.s32 1, %s1392_s21   ;;  %s29_s29 = sadd.s32 1, %s1388_s20 }
  0x3e   : > { %s26_s17 = ssub.s32 %s1392_s21, %s1556_s14  ;;  %p36_p13 = scmp.ne.s32.totalorder %s1388_s20, %s1384_s19 }
  0x3f   : > { %p27_p6 = scmp.eq.s32.totalorder %s26_s17, 0  ;;  %p37_p10 = scmp.eq.s32.totalorder %s1392_s21, 0 }
  0x40   : > { %p1771_p3 = scmp.eq.s32.totalorder %s1467_s22, 1  ;;  %p1156_p7 = scmp.lt.s32.totalorder %s1392_s21, 2 }
  0x41   : > { %s1572_s27 = scalar_select %p27_p6, %s1388_s20, %s29_s29  }
  0x42   : > { %p1566_p5 = por %p1771_p3, %p36_p13  ;;  %p38_p9 = por %p37_p10, %p36_p13 }
  0x43   : > { %s208_s30 = sand.u32 1, %s1388_s20   ;;  %s1005_s6 = sshll.u32 %s1392_s21, 7 }
  0x44   : > { %s1772_s23 = scalar_select %p1566_p5, 1, 0 }
  0x45   : > { %s1004_s7 = sshll.u32 %s208_s30, 3  ;;  %s1579_s8 = scalar_lea.hbm %s1758_s0, %s1005_s6 }
  0x46   : > { %s212_s9 = scalar_lea.vmem [#allocation4], %s1004_s7  ;;  %p1583_p11 = pnand %p1156_p7, %p38_p9 }
  0x47   : > { %s219_s10 = sshll.u32 %s212_s9, 4  ;;  %s209_s28 = scalar_lea.sflag [#allocation5], %s208_s30  ;;  %s1581_s10 = int_to_ptr.vmem [resolvable:$true] %s219_s10 }
  0x48   : > { %s1292_s12 = scalar_lea.hbm %s1579_s8, 128  ;;  %p1294_p0 = pneg %p1583_p11 }
  0x49   : > { %p1293_p12 = scmp.ne.s32.totalorder %s1579_s8, %s1292_s12  ;;  %s1297_s17 = scalar_lea.hbm %s1758_s0, 256 }
  0x4a   : > { %p1298_p13 = scmp.lt.u32.totalorder %s1579_s8, %s1758_s0  ;;  %p1299_p6 = scmp.lt.u32.totalorder %s1297_s17, %s1292_s12 }
  0x4b   : > { %p1295_p2 = pnand %p1294_p0, %p1293_p12  ;;  %p1301_p3 = scmp.lt.u32.totalorder %s1292_s12, %s1579_s8 }
  0x4c   : > { %p1300_p10 = por %p1299_p6, %p1298_p13 }
  0x4d   : > { %p1296_p1 = pneg %p1295_p2 }
  0x4e   : > { %p1302_p7 = por %p1301_p3, %p1300_p10 }
  0x50   : > { %p1303_p9 = pnand %p1302_p7, %p1296_p1 }
  0x52   : > { %1306 = shalt.err (!%p1303_p9)
}
  0x53   : > { %s1307_s30 = scalar_lea.vmem %s1581_s10, 128  ;;  %s1398_s15 = smov [#allocation4]  }
  0x54   : > { %p1308_p12 = scmp.ne.s32.totalorder %s1581_s10, %s1307_s30  ;;  %s1312_s16 = sshll.u32 %s1398_s15, 4  ;;  %s1313_s16 = int_to_ptr.vmem [resolvable:$false] %s1312_s16 }
  0x55   : > { %s1314_s9 = scalar_lea.vmem %s1313_s16, 256  ;;  %p1315_p4 = scmp.lt.s32.totalorder %s1581_s10, %s1313_s16 }
  0x56   : > { %p1310_p2 = pnand %p1308_p12, %p1294_p0  ;;  %p1316_p13 = scmp.lt.s32.totalorder %s1314_s9, %s1307_s30 }
  0x58   : > { %p1311_p5 = pneg %p1310_p2  ;;  %p1317_p6 = por %p1316_p13, %p1315_p4 }
  0x5a   : > { %p1318_p10 = pnand %p1317_p6, %p1311_p5 }
  0x5c   : > { %1321 = shalt.err (!%p1318_p10)
}
  0x5d   : > { %1149 = dma.hbm_to_vmem [thread:$0]  (!%p1583_p11), %s1579_s8, 128, %s1581_s10, %s209_s28  }
  0x5e   : > { %228 = sbr.rel (%p1486_p8) target bundleno = 1457 (0x5b1), region = 40  ;;  %s1615_s12 = sand.u32 (!%p1486_p8), 1, %s1384_s19  }
  0x5f   : > { %s1007_s13 = sshll.u32 (!%p1486_p8), %s1615_s12, 3  ;;  %s231_s29 = scalar_lea.sflag (!%p1486_p8), [#allocation5], %s1615_s12 }
  0x60   : > { %s234_s17 = scalar_lea.vmem (!%p1486_p8), [#allocation4], %s1007_s13  ;;  %p1774_p4 = scmp.ne.s32.totalorder (!%p1486_p8), %s1767_s24, 0 }
  0x65   : > { %1367 = dma.done.wait (%p1774_p4), %s231_s29, 128  }
  0x66   : > { %1369 = vsyncadd (%p1774_p4), %s231_s29, 4294967168  ;;  %p1775_p5 = scmp.eq.s32.totalorder %s1467_s22, 0 }
  0x68   : > { %1371 = dma.done.wait (%p1775_p5), [#allocation8], 512   ;;  %p1776_p8 = pmov %p1775_p5 }
  0x69   : > { %v1399_v0 = vmov 0.0   ;;  %vm1400_vm0 = vmmov 0   ;;  %v1212_v1 = vld [vmem:[#allocation7] sm:$0xff]   ;;  %v1213_v2 = vld [vmem:[#allocation7 + $0x8] sm:$0xff]   ;;  %v270_v3 = vld [vmem:[%s234_s17] sm:$0xff]  ;;  %vm295_vm1 = vcmask 261120  }
  0x6a   : > { %1373 = vsyncadd (%p1776_p8), [#allocation8], 4294966784  ;;  %1063 = vmatprep.subr.bf16.mxu0 %v1399_v0  ;;  %1067 = vmatprep.mubr.msk.bf16.mxu0 %vm1400_vm0, %v1399_v0  ;;  %v271_v4 = vpack.c.bf16 %v270_v3, %v270_v3  ;;  %v1011_v5 = vld [vmem:[%s1760_s2] ss:$0 sm:$0xff]  ;;  %vm340_vm2 = vcmask 781312   ;;  %s1401_s8 = smov 120  }
  0x6b   : > { %1071 = vmatprep.subr.bf16.mxu1 %v1399_v0  ;;  %1073 = vmatprep.mubr.msk.bf16.mxu1 %vm1400_vm0, %v1399_v0  ;;  %s1402_s10 = smov 96   ;;  %s1403_s11 = smov 80   ;;  %vm348_vm3 = vcmask 64512   ;;  %vm410_vm4 = vcmask 1043456   ;;  %vm457_vm5 = vcmask 60416   ;;  %vm580_vm6 = vcmask 126016  }
  0x6c   : > { %1064 = vmatpush3.bf16.msra.mxu0 %v1212_v1  ;;  %s1404_s28 = smov 88   ;;  %s1405_s7 = smov 72   ;;  %vm703_vm7 = vcmask 191616   ;;  %vm826_vm8 = vcmask 257216  }
  0x6d   : > { %1065 = vmatprep.subr.bf16.mxu0 %v1399_v0  ;;  %s1406_s6 = smov 112   ;;  %s1407_s30 = smov 104  }
  0x6e   : > { %s1408_s15 = smov 56   ;;  %s1409_s16 = smov 64  }
  0x6f   : > { %s1410_s9 = smov 40   ;;  %s1411_s29 = smov 48  }
  0x70   : > { %1066 = vmatpush3.bf16.msra.mxu0 %v1213_v2  ;;  %s1412_s17 = smov 8   ;;  %s1413_s24 = smov 16  }
  0x71   : > { %1077 = vmatprep.subr.bf16.mxu0 %v1399_v0  ;;  %s1414_s26 = smov 24   ;;  %p1777_p0 = scmp.ne.s32.totalorder %s1772_s23, 0 }
  0x73   : > { %1068 = vmatmul.mubr.msk.bf16.vlgmr.msra.gmra.mrb[0].mxu0 %vm295_vm1, %v271_v4 }
  0x74   : > { %1079 = vmatprep.mubr.msk.bf16.mxu0 %vm1400_vm0, %v1399_v0 }
 0x146   : > { %v333_v6 = vpop.f32.mrb[0].mxu0 }
 0x147   : > { %v334_v7 = vadd.f32 %v1011_v5, %v333_v6  ;;  %v1069_v8 = vpop.f32.mrb[1].mxu0 }
 0x148   : > { %v336_v9 = vpop.f32.mrb[2].mxu0 }
 0x149   : > { %v339_v10 = vpack.c.bf16 %v334_v7, %v334_v7  ;;  %v1070_v11 = vpop.f32.mrb[3].mxu0 }
 0x14b   : > { %341 = vst.msk [vmem:[#allocation2] sm:$0xf] %vm340_vm2, %v339_v10 }
 0x152   : > { %v1643_v12 = vld [vmem:[#allocation2] ss:$0 sps:$4 sm:$0xff]  }
 0x153   : > { %v342_v13 = vld [vmem:[#allocation2] sm:$0xf]  ;;  %463 = vrot.lane.b32.xlu1 %v1643_v12, %s1401_s8 }
 0x154   : > { %v1645_v14 = vcombine.low %v342_v13, %v342_v13  ;;  %v1649_v15 = vld [vmem:[#allocation2] ss:$0 sps:$4 sm:$0xff]  }
 0x155   : > { %v1217_v16 = vld [vmem:[#allocation2] ss:$0 sps:$4 sm:$0xff]  }
 0x156   : > { %346 = vrot.lane.b32.xlu0 %v1645_v14, %s1402_s10 }
 0x157   : > { %588 = vrot.lane.b32.xlu1 %v1649_v15, %s1403_s11  ;;  %s1035_s11 = sshll.u32 %s1467_s22, 7  ;;  %s897_s22 = scalar_lea.sflag [#allocation6], %s1615_s12 }
 0x15a   : > { %465 = vrot.lane.b32.xlu0 %v1643_v12, %s1404_s28  ;;  %s268_s28 = scalar_lea.vmem [#allocation10], %s1007_s13 }
 0x15b   : > { %711 = vrot.lane.b32.xlu1 %v1217_v16, %s1405_s7  ;;  %s910_s7 = sshll.u32 %s268_s28, 4  ;;  %s1715_s7 = int_to_ptr.vmem [resolvable:$true] %s910_s7 }
 0x15c   : > { %s1322_s13 = scalar_lea.vmem %s1715_s7, 128 }
 0x15d   : > { %p1323_p11 = scmp.ne.s32.totalorder %s1715_s7, %s1322_s13 }
 0x15e   : > { %586 = vrot.lane.b32.xlu0 %v1649_v15, %s1406_s6 }
 0x15f   : > { %p1324_p1 = pnand %p1323_p11, %p1777_p0 }
 0x161   : > { %p1325_p3 = pneg %p1324_p1 }
 0x162   : > { %709 = vrot.lane.b32.xlu0 %v1217_v16, %s1407_s30 }
 0x1c5   : > { %v464_v20 = vpop.permute.xlu1 %463 }
 0x1c8   : > { %v347_v17 = vpop.permute.xlu0 %346 }
 0x1c9   : > { %v353_v18 = vsel %vm348_vm3, %v347_v17, 0  ;;  %v589_v22 = vpop.permute.xlu1 %588 }
 0x1ca   : > { %1072 = vmatpush3.bf16.xpose.msra.mxu1 %v353_v18  ;;  %v594_v23 = vsel %vm348_vm3, %v589_v22, 0 }
 0x1cb   : > { %1083 = vmatprep.subr.bf16.mxu1 %v1399_v0 }
 0x1cc   : > { %v466_v19 = vpop.permute.xlu0 %465 }
 0x1cd   : > { %v471_v21 = vsel %vm348_vm3, %v466_v19, 0  ;;  %v712_v24 = vpop.permute.xlu1 %711 }
 0x1ce   : > { %v717_v26 = vsel %vm348_vm3, %v712_v24, 0 }
 0x1d0   : > { %v587_v25 = vpop.permute.xlu0 %586 }
 0x1d1   : > { %1074 = vmatmul.mubr.msk.bf16.vlgmr.msra.gmra.mrb[0].mxu1 %vm348_vm3, %v342_v13 }
 0x1d2   : > { %1084 = vmatpush3.bf16.xpose.msra.mxu1 %v471_v21  ;;  %1085 = vmatprep.mubr.msk.bf16.mxu1 %vm1400_vm0, %v1399_v0 }
 0x1d3   : > { %1095 = vmatprep.subr.bf16.mxu1 %v1399_v0 }
 0x1d4   : > { %v710_v27 = vpop.permute.xlu0 %709 }
 0x1d9   : > { %1086 = vmatmul.mubr.msk.bf16.vlgmr.msra.gmra.mrb[4].mxu1 %vm348_vm3, %v464_v20 }
 0x1da   : > { %1096 = vmatpush3.bf16.xpose.msra.mxu1 %v594_v23  ;;  %1097 = vmatprep.mubr.msk.bf16.mxu1 %vm1400_vm0, %v1399_v0 }
 0x1db   : > { %1107 = vmatprep.subr.bf16.mxu1 %v1399_v0 }
 0x1e1   : > { %1098 = vmatmul.mubr.msk.bf16.vlgmr.msra.gmra.mrb[8].mxu1 %vm348_vm3, %v587_v25 }
 0x1e2   : > { %1108 = vmatpush3.bf16.xpose.msra.mxu1 %v717_v26  ;;  %1109 = vmatprep.mubr.msk.bf16.mxu1 %vm1400_vm0, %v1399_v0 }
 0x1e3   : > { %1119 = vmatprep.subr.bf16.mxu1 %v1399_v0 }
 0x1e9   : > { %1110 = vmatmul.mubr.msk.bf16.vlgmr.msra.gmra.mrb[12].mxu1 %vm348_vm3, %v710_v27 }
 0x1ea   : > { %1123 = vmatprep.mubr.msk.bf16.mxu1 %vm1400_vm0, %v1399_v0 }
 0x2a4   : > { %v389_v28 = vpop.f32.mrb[0].mxu1 }
 0x2a5   : > { %v1075_v29 = vpop.f32.mrb[1].mxu1  ;;  %v395_v30 = vsel %vm348_vm3, %v389_v28, -inf }
 0x2a6   : > { %396 = vmax.xlane.f32.xlu1 %v395_v30  ;;  %v392_v31 = vpop.f32.mrb[2].mxu1 }
 0x2a7   : > { %v1076_v32 = vpop.f32.mrb[3].mxu1 }
 0x2ac   : > { %v507_v33 = vpop.f32.mrb[4].mxu1 }
 0x2ad   : > { %v1087_v34 = vpop.f32.mrb[5].mxu1  ;;  %v513_v35 = vsel %vm348_vm3, %v507_v33, -inf }
 0x2ae   : > { %514 = vmax.xlane.f32.xlu0 %v513_v35  ;;  %v510_v36 = vpop.f32.mrb[6].mxu1 }
 0x2af   : > { %v1088_v37 = vpop.f32.mrb[7].mxu1 }
 0x2b4   : > { %v630_v38 = vpop.f32.mrb[8].mxu1 }
 0x2b5   : > { %v1099_v39 = vpop.f32.mrb[9].mxu1  ;;  %v636_v40 = vsel %vm348_vm3, %v630_v38, -inf }
 0x2b6   : > { %637 = vmax.xlane.f32.xlu0 %v636_v40  ;;  %v633_v41 = vpop.f32.mrb[10].mxu1  ;;  %v1218_v39 = vld [vmem:[#allocation9] sm:$0xff]  }
 0x2b7   : > { %523 = vrot.lane.b32.xlu1 %v1643_v12, %s1408_s15  ;;  %v1100_v42 = vpop.f32.mrb[11].mxu1  ;;  %1120 = vmatpush3.bf16.msra.mxu1 %v1218_v39  ;;  %s1713_s15 = scalar_lea.hbm %s1763_s5, %s1035_s11 }
 0x2b8   : > { %1121 = vmatprep.subr.bf16.mxu1 %v1399_v0 }
 0x2bc   : > { %v753_v43 = vpop.f32.mrb[12].mxu1 }
 0x2bd   : > { %v1111_v44 = vpop.f32.mrb[13].mxu1  ;;  %v759_v47 = vsel %vm348_vm3, %v753_v43, -inf }
 0x2be   : > { %v756_v45 = vpop.f32.mrb[14].mxu1 }
 0x2bf   : > { %v1112_v46 = vpop.f32.mrb[15].mxu1 }
 0x2cc   : > { %405 = vrot.lane.b32.xlu0 %v1645_v14, %s1409_s16  ;;  %s1415_s16 = smov [#allocation10]  }
 0x2d0   : > { %769 = vrot.lane.b32.xlu0 %v1217_v16, %s1410_s9  ;;  %s1326_s9 = sshll.u32 %s1415_s16, 4  ;;  %s1327_s9 = int_to_ptr.vmem [resolvable:$false] %s1326_s9 }
 0x2d1   : > { %p1329_p7 = scmp.lt.s32.totalorder %s1715_s7, %s1327_s9 }
 0x2db   : > { %760 = vmax.xlane.f32.xlu1 %v759_v47 }
 0x2ec   : > { %646 = vrot.lane.b32.xlu1 %v1649_v15, %s1411_s29  ;;  %s1328_s29 = scalar_lea.vmem %s1327_s9, 256 }
 0x2ed   : > { %p1330_p9 = scmp.lt.s32.totalorder %s1328_s29, %s1322_s13 }
 0x2ef   : > { %p1331_p12 = por %p1330_p9, %p1329_p7 }
 0x2f1   : > { %p1332_p2 = pnand %p1331_p12, %p1325_p3 }
 0x333   : > { %v397_v48 = vpop.xlane.xlu1 %396 }
 0x334   : > { %v398_v49 = vsub.f32 %v389_v28, %v397_v48 }
 0x336   : > { %v399_v50 = vmul.f32 1.442695, %v398_v49 }
 0x337   : > { %v524_v60 = vpop.permute.xlu1 %523 }
 0x338   : > { %1220 = vpow2.f32 %v399_v50  ;;  %v529_v1 = vsel %vm410_vm4, %v524_v60, 0 }
 0x33b   : > { %v515_v51 = vpop.xlane.xlu0 %514 }
 0x33c   : > { %v516_v52 = vsub.f32 %v507_v33, %v515_v51 }
 0x33e   : > { %v517_v53 = vmul.f32 1.442695, %v516_v52 }
 0x340   : > { %1222 = vpow2.f32 %v517_v53 }
 0x342   : > { %v1221_v57 = vpop.eup %1220 }
 0x343   : > { %v638_v54 = vpop.xlane.xlu0 %637  ;;  %v404_v62 = vpack.c.bf16 %v1221_v57, %v1221_v57  ;;  %v401_v2 = vsel %vm348_vm3, %v1221_v57, 0.0 }
 0x344   : > { %v639_v55 = vsub.f32 %v630_v38, %v638_v54  ;;  %v1030_v54 = vld [vmem:[%s1762_s4] ss:$0 sm:$0xff] }
 0x346   : > { %v640_v56 = vmul.f32 1.442695, %v639_v55 }
 0x347   : > { %v406_v58 = vpop.permute.xlu0 %405 }
 0x348   : > { %1224 = vpow2.f32 %v640_v56  ;;  %v412_v59 = vsel %vm410_vm4, %v406_v58, 0 }
 0x349   : > { %1078 = vmatpush3.bf16.msra.mxu0 %v412_v59 }
 0x34a   : > { %v1223_v61 = vpop.eup %1222  ;;  %1089 = vmatprep.subr.bf16.mxu0 %v1399_v0 }
 0x34b   : > { %v519_v63 = vsel %vm348_vm3, %v1223_v61, 0.0  ;;  %v522_v4 = vpack.c.bf16 %v1223_v61, %v1223_v61  ;;  %v770_v11 = vpop.permute.xlu0 %769 }
 0x34c   : > { %520 = vadd.xlane.f32.xlu1 %v519_v63  ;;  %1080 = vmatmul.mubr.msk.bf16.vlgmr.msra.gmra.mrb[4].mxu0 %vm348_vm3, %v404_v62  ;;  %v775_v13 = vsel %vm410_vm4, %v770_v11, 0 }
 0x34d   : > { %1090 = vmatpush3.bf16.msra.mxu0 %v529_v1  ;;  %1091 = vmatprep.mubr.msk.bf16.mxu0 %vm1400_vm0, %v1399_v0 }
 0x34e   : > { %1101 = vmatprep.subr.bf16.mxu0 %v1399_v0 }
 0x350   : > { %402 = vadd.xlane.f32.xlu1 %v401_v2 }
 0x352   : > { %v1225_v3 = vpop.eup %1224 }
 0x353   : > { %v642_v5 = vsel %vm348_vm3, %v1225_v3, 0.0  ;;  %v645_v12 = vpack.c.bf16 %v1225_v3, %v1225_v3 }
 0x354   : > { %643 = vadd.xlane.f32.xlu0 %v642_v5  ;;  %1092 = vmatmul.mubr.msk.bf16.vlgmr.msra.gmra.mrb[8].mxu0 %vm348_vm3, %v522_v4 }
 0x355   : > { %1103 = vmatprep.mubr.msk.bf16.mxu0 %vm1400_vm0, %v1399_v0 }
 0x368   : > { %v761_v6 = vpop.xlane.xlu1 %760 }
 0x369   : > { %v762_v7 = vsub.f32 %v753_v43, %v761_v6  ;;  %v1219_v43 = vld [vmem:[#allocation9 + $0x8] sm:$0xff]  }
 0x36a   : > { %1122 = vmatpush3.bf16.msra.mxu1 %v1219_v43 }
 0x36b   : > { %v763_v8 = vmul.f32 1.442695, %v762_v7 }
 0x36c   : > { %v647_v9 = vpop.permute.xlu1 %646 }
 0x36d   : > { %1226 = vpow2.f32 %v763_v8  ;;  %v652_v10 = vsel %vm410_vm4, %v647_v9, 0 }
 0x36e   : > { %1102 = vmatpush3.bf16.msra.mxu0 %v652_v10 }
 0x36f   : > { %1113 = vmatprep.subr.bf16.mxu0 %v1399_v0 }
 0x371   : > { %1104 = vmatmul.mubr.msk.bf16.vlgmr.msra.gmra.mrb[12].mxu0 %vm348_vm3, %v645_v12 }
 0x372   : > { %1114 = vmatpush3.bf16.msra.mxu0 %v775_v13  ;;  %1115 = vmatprep.mubr.msk.bf16.mxu0 %vm1400_vm0, %v1399_v0 }
 0x377   : > { %v1227_v14 = vpop.eup %1226 }
 0x378   : > { %v765_v15 = vsel %vm348_vm3, %v1227_v14, 0.0  ;;  %v768_v16 = vpack.c.bf16 %v1227_v14, %v1227_v14 }
 0x379   : > { %766 = vadd.xlane.f32.xlu0 %v765_v15 }
 0x37a   : > { %1116 = vmatmul.mubr.msk.bf16.vlgmr.msra.gmra.mrb[16].mxu0 %vm348_vm3, %v768_v16 }
 0x3d9   : > { %v521_v17 = vpop.xlane.xlu1 %520 }
 0x3dd   : > { %v403_v18 = vpop.xlane.xlu1 %402 }
 0x3de   : > { %1228 = vrcp.f32 %v403_v18 }
 0x3df   : > { %1230 = vrcp.f32 %v521_v17 }
 0x3e1   : > { %v644_v33 = vpop.xlane.xlu0 %643 }
 0x3e2   : > { %1232 = vrcp.f32 %v644_v33 }
 0x3e8   : > { %v1229_v19 = vpop.eup %1228 }
 0x3e9   : > { %v1231_v26 = vpop.eup %1230 }
 0x3ec   : > { %v1233_v35 = vpop.eup %1232 }
 0x406   : > { %v767_v34 = vpop.xlane.xlu0 %766 }
 0x407   : > { %1234 = vrcp.f32 %v767_v34 }
 0x411   : > { %v1235_v44 = vpop.eup %1234 }
 0x41f   : > { %v448_v20 = vpop.f32.mrb[4].mxu0 }
 0x420   : > { %v455_v21 = vmul.f32 %v1229_v19, %v448_v20  ;;  %v1081_v22 = vpop.f32.mrb[5].mxu0 }
 0x421   : > { %v451_v23 = vpop.f32.mrb[6].mxu0 }
 0x422   : > { %v456_v24 = vpack.c.bf16 %v455_v21, %v455_v21  ;;  %v1082_v25 = vpop.f32.mrb[7].mxu0 }
 0x424   : > { %458 = vst.msk [vmem:[#allocation3] sm:$0xf] %vm457_vm5, %v456_v24 }
 0x427   : > { %v565_v27 = vpop.f32.mrb[8].mxu0 }
 0x428   : > { %v572_v28 = vmul.f32 %v1231_v26, %v565_v27  ;;  %v1093_v29 = vpop.f32.mrb[9].mxu0 }
 0x429   : > { %v568_v30 = vpop.f32.mrb[10].mxu0 }
 0x42a   : > { %v1038_v31 = vpack.c.bf16 %v572_v28, %v572_v28  ;;  %v1094_v32 = vpop.f32.mrb[11].mxu0 }
 0x42c   : > { %577 = vrot.lane.b32.xlu0 %v1038_v31, %s1412_s17 }
 0x444   : > { %v688_v36 = vpop.f32.mrb[12].mxu0 }
 0x445   : > { %v695_v37 = vmul.f32 %v1233_v35, %v688_v36  ;;  %v1105_v38 = vpop.f32.mrb[13].mxu0 }
 0x446   : > { %v691_v40 = vpop.f32.mrb[14].mxu0 }
 0x447   : > { %v1039_v41 = vpack.c.bf16 %v695_v37, %v695_v37  ;;  %v1106_v42 = vpop.f32.mrb[15].mxu0 }
 0x449   : > { %700 = vrot.lane.b32.xlu1 %v1039_v41, %s1413_s24 }
 0x44d   : > { %v811_v45 = vpop.f32.mrb[16].mxu0 }
 0x44e   : > { %v818_v46 = vmul.f32 %v1235_v44, %v811_v45  ;;  %v1117_v47 = vpop.f32.mrb[17].mxu0 }
 0x44f   : > { %v814_v48 = vpop.f32.mrb[18].mxu0 }
 0x450   : > { %v1040_v49 = vpack.c.bf16 %v818_v46, %v818_v46  ;;  %v1118_v50 = vpop.f32.mrb[19].mxu0 }
 0x452   : > { %823 = vrot.lane.b32.xlu1 %v1040_v49, %s1414_s26 }
 0x49e   : > { %v578_v51 = vpop.permute.xlu0 %577 }
 0x49f   : > { %581 = vst.msk [vmem:[#allocation3] sm:$0xf] %vm580_vm6, %v578_v51 }
 0x4bb   : > { %v701_v52 = vpop.permute.xlu1 %700 }
 0x4bc   : > { %704 = vst.msk [vmem:[#allocation3] sm:$0xf] %vm703_vm7, %v701_v52 }
 0x4c4   : > { %v824_v0 = vpop.permute.xlu1 %823 }
 0x4c5   : > { %827 = vst.msk [vmem:[#allocation3] sm:$0xf] %vm826_vm8, %v824_v0 }
 0x4cc   : > { %v828_v53 = vld [vmem:[#allocation3] sm:$0xf] }
 0x4cd   : > { %1124 = vmatmul.mubr.msk.bf16.vlgmr.msra.gmra.mrb[16].mxu1 %vm295_vm1, %v828_v53 }
 0x5a0   : > { %v889_v55 = vpop.f32.mrb[16].mxu1 }
 0x5a1   : > { %v890_v56 = vadd.f32 %v1030_v54, %v889_v55  ;;  %v1125_v57 = vpop.f32.mrb[17].mxu1 }
 0x5a2   : > { %v892_v58 = vpop.f32.mrb[18].mxu1 }
 0x5a3   : > { %v1126_v59 = vpop.f32.mrb[19].mxu1  ;;  %895 = vst.msk [vmem:[%s268_s28] sm:$0xff] %vm295_vm1, %v890_v56 }
 0x5a4   : > { %1335 = shalt.err (!%p1332_p2)
}
 0x5a5   : > { %s1336_s12 = scalar_lea.hbm %s1713_s15, 128  ;;  %s1340_s26 = scalar_lea.hbm %s1763_s5, 256 }
 0x5a6   : > { %p1337_p13 = scmp.ne.s32.totalorder %s1713_s15, %s1336_s12  ;;  %p1341_p4 = scmp.lt.u32.totalorder %s1713_s15, %s1763_s5 }
 0x5a7   : > { %p1342_p5 = scmp.lt.u32.totalorder %s1340_s26, %s1336_s12  ;;  %p1344_p11 = scmp.lt.u32.totalorder %s1336_s12, %s1713_s15 }
 0x5a8   : > { %p1338_p6 = pnand %p1337_p13, %p1777_p0 }
 0x5a9   : > { %p1343_p8 = por %p1342_p5, %p1341_p4 }
 0x5aa   : > { %p1339_p10 = pneg %p1338_p6 }
 0x5ab   : > { %p1345_p1 = por %p1344_p11, %p1343_p8 }
 0x5ad   : > { %p1346_p3 = pnand %p1345_p1, %p1339_p10 }
 0x5af   : > { %1349 = shalt.err (!%p1346_p3)
}
 0x5b0   : > { %1137 = dma.vmem_to_hbm [thread:$0]  (%p1777_p0), %s1715_s7, 128, %s1713_s15, %s897_s22  }
 0x5b1 PF: > { %s922_s11 = sand.u32 1, %s1380_s18   ;;  %p1778_p7 = scmp.ne.s32.totalorder %s1768_s25, 0 }
 0x5b2   : > { %p1779_p9 = scmp.ge.s32.totalorder %s1392_s21, 2  ;;  %s923_s28 = scalar_lea.sflag [#allocation6], %s922_s11 }
 0x5b4   : > { %p1151_p12 = pnand %p1779_p9, %p1778_p7 }
 0x5b6   : > { %1375 = dma.done.wait (!%p1151_p12), %s923_s28, 128  }
 0x5b7   : > { %1377 = vsyncadd (!%p1151_p12), %s923_s28, 4294967168  ;;  %p19_p2 = scmp.ge.s32.totalorder %s1556_s14, 4   ;;  %s1780_s18 = smov %s1384_s19 }
 0x5b8   : > { %s1781_s19 = smov %s1388_s20  ;;  %s1782_s20 = smov %s1572_s27 }
 0x5b9   : > { %s1783_s21 = smov %s1556_s14  ;;  %21 = sbr.rel (!%p19_p2) target bundleno = 6 (0x6), region = 93 }
 0x5c0   :  { %928 = vsyncpa [#allocation5], 1 }
 0x5c1   :  { %930 = vsyncpa [#allocation5 + $0x1], 1 }
 0x5c2   :  { %931 = vsyncpa [#allocation8], 1 }
 0x5c3   :  { %932 = vsyncpa [#allocation6], 1 }
 0x5c4   :  { %934 = vsyncpa [#allocation6 + $0x1], 1 }

</bundles_post_ra>
